<compile_context>
chip_gen: v7x
topology: tpu7x:2x2x1
jax: 0.10.0
libtpu: 0.0.40
codegen_flags: <defaults>
</compile_context>

<pallas_src>
import jax
import jax.numpy as jnp
from jax.experimental import pallas as pl
from jax.experimental.pallas import tpu as pltpu


_LANE = 128
_TARGET_BLOCK_BYTES = 4 * 1024 * 1024   # ~4 MiB per input block
_VMEM_LIMIT_BYTES = 32 * 1024 * 1024    # 2x double-buffered (in+out) + headroom


def _dense_inject_kernel(layer_ref, w_ref, x_ref, o_ref):
    # layer_ref : SMEM (1,)        int32   -- scalar-prefetched layer index
    # w_ref     : SMEM (n_layer,)  float32 -- inject_weights
    # x_ref     : VMEM (tm, L)              dense tile
    # o_ref     : VMEM (tm, L)              output tile
    scale = jnp.maximum(w_ref[layer_ref[0]], 0.0).astype(x_ref.dtype)
    o_ref[...] = x_ref[...] * scale          # native-dtype stream


def _ceil_to(x, m):
    return -(-x // m) * m


def _sublane_pack(itemsize):
    # f32 -> 8, bf16/f16 -> 16, int8/fp8 -> 32 sublanes per packed vreg tile.
    return {4: 8, 2: 16, 1: 32}.get(itemsize, 8)


def _choose_tiling(total, itemsize):
    """Pick (n_lanes, tm, m_rows) for the flattened lane-dense slab."""
    sub = _sublane_pack(itemsize)

    # Lane width: widest lane-dense candidate that evenly divides the element
    # count (no padding); otherwise 128 lanes + minimal zero padding.  Never
    # a sub-128 (masked-store) layout, never an unbounded natural last dim.
    n_lanes = _LANE
    for cand in (4096, 2048, 1024, 512, 256, _LANE):
        if total % cand == 0:
            n_lanes = cand
            break

    rows_needed = -(-total // n_lanes)            # ceil(total / n_lanes)
    rows_min_padded = _ceil_to(rows_needed, sub)

    # Row tile: ~4 MiB per input block, multiple of the sublane packing,
    # never larger than the (sublane-padded) data extent.
    tm = max(sub, (_TARGET_BLOCK_BYTES // (n_lanes * itemsize)) // sub * sub)
    tm = min(tm, rows_min_padded)

    # If everything fits in one block but is big enough to split, use two
    # blocks so the "parallel" axis can actually shard across v7x's 2 TCs.
    if tm >= rows_needed and rows_needed >= 2 * sub:
        tm = _ceil_to((rows_needed + 1) // 2, sub)

    m_rows = _ceil_to(rows_needed, tm)            # rows padded to tile multiple
    return n_lanes, tm, m_rows


@jax.jit
def dense_inject_pallas(dense, inject_weights, layer_num):
    """out = relu(inject_weights)[layer_num] * dense, fused in one kernel."""
    orig_shape = dense.shape
    total = dense.size
    itemsize = dense.dtype.itemsize

    n_lanes, tm, m_rows = _choose_tiling(total, itemsize)
    padded_total = m_rows * n_lanes

    flat = dense.reshape(-1)
    if padded_total != total:
        flat = jnp.pad(flat, (0, padded_total - total))
    x2 = flat.reshape(m_rows, n_lanes)

    n_layer = inject_weights.shape[0]
    # Clamp the dynamic index: Pallas has no runtime bounds check on SMEM refs.
    layer_arr = jnp.clip(
        jnp.asarray(layer_num, dtype=jnp.int32), 0, n_layer - 1).reshape(1)
    w_f32 = inject_weights.astype(jnp.float32)

    out2 = pl.pallas_call(
        _dense_inject_kernel,
        out_shape=jax.ShapeDtypeStruct((m_rows, n_lanes), dense.dtype),
        grid_spec=pltpu.PrefetchScalarGridSpec(
            num_scalar_prefetch=1,               # layer_num -> SMEM
            grid=(m_rows // tm,),
            in_specs=[
                # inject_weights: tiny, resident in SMEM, scalar-indexed.
                pl.BlockSpec(memory_space=pltpu.MemorySpace.SMEM),
                # dense: lane-dense row tiles streamed through VMEM.
                pl.BlockSpec((tm, n_lanes), lambda i, layer: (i, 0)),
            ],
            out_specs=pl.BlockSpec((tm, n_lanes), lambda i, layer: (i, 0)),
        ),
        compiler_params=pltpu.CompilerParams(
            dimension_semantics=("parallel",),   # megacore-shardable row axis
            vmem_limit_bytes=_VMEM_LIMIT_BYTES),
    )(layer_arr, w_f32, x2)

    out_flat = out2.reshape(-1)
    if padded_total != total:
        out_flat = out_flat[:total]
    return out_flat.reshape(orig_shape)


def _reference(dense, inject_weights, layer_num):
    scale = jnp.maximum(inject_weights, 0.0)[layer_num].astype(dense.dtype)
    return scale * dense


if __name__ == "__main__":
    # Small config consistent with the module: n_layer=4; dense is (B, T, C)
    # with batch=2, seq=8, hidden=32.
    n_layer = 4
    B, T, C = 2, 8, 32

    # Module init: arange(n_layer, 0, -1) / n_layer -> [1.0, 0.75, 0.5, 0.25]
    inject_weights = jnp.arange(n_layer, 0, -1, dtype=jnp.float32) / n_layer

    key = jax.random.PRNGKey(0)
    dense = jax.random.normal(key, (B, T, C), dtype=jnp.float32)

    # 1) Standard forward at layer_num=1.
    out = jax.block_until_ready(dense_inject_pallas(dense, inject_weights, 1))
    assert out.shape == dense.shape
    assert jnp.allclose(out, _reference(dense, inject_weights, 1),
                        atol=1e-6, rtol=1e-6)

    # 2) ReLU path: a (trained) negative weight must gate the output to zero.
    w_neg = inject_weights.at[2].set(-0.3)
    out2 = jax.block_until_ready(dense_inject_pallas(dense, w_neg, 2))
    assert jnp.allclose(out2, jnp.zeros_like(dense), atol=0.0)

    # 3) Awkward (non-128-multiple) shape: exercises the pad->kernel->slice
    #    path and a multi-step "parallel" grid.
    dense_odd = jax.random.normal(jax.random.PRNGKey(0), (3, 37, 53),
                                  dtype=jnp.float32)
    out3 = jax.block_until_ready(dense_inject_pallas(dense_odd,
                                                     inject_weights, 0))
    assert jnp.allclose(out3, _reference(dense_odd, inject_weights, 0),
                        atol=1e-6, rtol=1e-6)

    # 4) bf16 stream: gate is cast to the streamed dtype inside the kernel.
    dense_bf16 = jax.random.normal(jax.random.PRNGKey(1), (2, 64, 64),
                                   dtype=jnp.bfloat16)
    out4 = jax.block_until_ready(dense_inject_pallas(dense_bf16,
                                                     inject_weights, 3))
    assert out4.dtype == jnp.bfloat16
    assert jnp.allclose(out4.astype(jnp.float32),
                        _reference(dense_bf16, inject_weights, 3)
                        .astype(jnp.float32),
                        atol=1e-2, rtol=1e-2)

    print("KERNEL_OK")
</pallas_src>

<mosaic_0001>
module attributes {stable_mosaic.version = 11 : i64} {
  func.func @_dense_inject_kernel(%arg0: i32, %arg1: memref<1xi32, #tpu.memory_space<smem>>, %arg2: memref<4xf32, #tpu.memory_space<smem>>, %arg3: memref<8x512xf32, #tpu.memory_space<vmem>>, %arg4: memref<8x512xf32, #tpu.memory_space<vmem>>) attributes {dimension_semantics = [#tpu.dimension_semantics<parallel>], iteration_bounds = array<i64: 1>, scalar_prefetch = 1 : i64, scratch_operands = 0 : i64, tpu.core_type = #tpu.core_type<tc>, window_params = [{transform_indices = @transform_0, window_bounds = array<i64: 4>}, {transform_indices = @transform_1, window_bounds = array<i64: 8, 512>}, {transform_indices = @transform_2, window_bounds = array<i64: 8, 512>}]} {
    %c0 = arith.constant 0 : index
    %0 = memref.load %arg1[%c0] : memref<1xi32, #tpu.memory_space<smem>>
    %1 = arith.index_cast %0 : i32 to index
    %2 = memref.load %arg2[%1] : memref<4xf32, #tpu.memory_space<smem>>
    %cst = arith.constant 0.000000e+00 : f32
    %3 = arith.maximumf %2, %cst : f32
    %c0_0 = arith.constant 0 : index
    %c0_1 = arith.constant 0 : index
    %4 = vector.load %arg3[%c0_0, %c0_1] : memref<8x512xf32, #tpu.memory_space<vmem>>, vector<8x512xf32>
    %5 = vector.broadcast %3 : f32 to vector<8x512xf32>
    %6 = arith.mulf %4, %5 : vector<8x512xf32>
    %c0_2 = arith.constant 0 : index
    %c0_3 = arith.constant 0 : index
    %7 = vector.load %arg4[%c0_2, %c0_3] : memref<8x512xf32, #tpu.memory_space<vmem>>, vector<8x512xf32>
    tpu.vector_store %arg4[%c0_2, %c0_3], %6 {strides = array<i32>} : memref<8x512xf32, #tpu.memory_space<vmem>>, vector<8x512xf32>,
    return
  }
  func.func @transform_0(%arg0: i32, %arg1: memref<1xi32, #tpu.memory_space<smem>>) -> i32 {
    %c0_i32 = arith.constant 0 : i32
    %c0_i32_0 = arith.constant 0 : i32
    return %c0_i32 : i32
  }
  func.func @transform_1(%arg0: i32, %arg1: memref<1xi32, #tpu.memory_space<smem>>) -> (i32, i32) {
    %c0_i32 = arith.constant 0 : i32
    %c0_i32_0 = arith.constant 0 : i32
    return %arg0, %c0_i32 : i32, i32
  }
  func.func @transform_2(%arg0: i32, %arg1: memref<1xi32, #tpu.memory_space<smem>>) -> (i32, i32) {
    %c0_i32 = arith.constant 0 : i32
    %c0_i32_0 = arith.constant 0 : i32
    return %arg0, %c0_i32 : i32, i32
  }
}

</mosaic_0001>

<bundles_post_ra>
// kernel: dense_inject_pallas.1
= control target key start
LH: loop header
LB: loop body
LE: loop exit
PB: predicated region body
PF: predicated region fallthrough
CT: control target
= control target key end

     0   :  { %9 = vsyncpa [#allocation5], 0  ;;  %s115_s0 = inlined_call_operand.<no memory space> [shape: s32[1], index: 0, kind: input, shape index: {}]   ;;  %s116_s1 = inlined_call_operand.vmem [shape: f32[4], index: 1, kind: input, shape index: {}]   ;;  %s117_s2 = inlined_call_operand.vmem [shape: f32[8,512], index: 2, kind: input, shape index: {}]   ;;  %s118_s3 = inlined_call_operand.vmem [shape: f32[8,512], index: 3, kind: output, shape index: {}]  }
   0x1   :  { %s16_s14 = sshll.u32 %s116_s1, 4  ;;  %s17_s14 = int_to_ptr.vmem [resolvable:$true] %s16_s14 }
   0x2   :  { %s49_s15 = scalar_lea.vmem %s17_s14, 16  ;;  %p54_p1 = scmp.lt.s32.totalorder %s17_s14, %s17_s14 }
   0x3   :  { %p50_p0 = scmp.ne.s32.totalorder %s17_s14, %s49_s15  ;;  %p55_p2 = scmp.lt.s32.totalorder %s49_s15, %s49_s15 }
   0x5   :  { %p56_p3 = por %p55_p2, %p54_p1 }
   0x7   :  { %p57_p4 = pnand %p56_p3, %p50_p0 }
   0x9   :  { %60 = shalt.err (!%p57_p4)
}
   0xa   :  { %s63_s16 = smov [#allocation4]  }
   0xb   :  { %19 = dma.vmem_to_smem %s17_s14, 16, %s63_s16, [#allocation5]  }
   0xc   :  { %61 = dma.done.wait [#allocation5], 16  }
   0xd   :  { %62 = vsyncadd [#allocation5], 4294967280 }
   0xe   :  { %25 = sfence }
   0xf   :  { %s27_s19 = sld [smem:[#allocation4 + %s115_s0]]  ;;  %v29_v0 = vld [vmem:[%s117_s2] sm:$0xff]  ;;  %v30_v1 = vld [vmem:[%s117_s2 + $0x8] sm:$0xff]  ;;  %v31_v2 = vld [vmem:[%s117_s2 + $0x10] sm:$0xff]  ;;  %s64_s27 = smov 0.0  }
  0x10   :  { %v32_v3 = vld [vmem:[%s117_s2 + $0x18] sm:$0xff] }
  0x15   :  { %s28_s28 = smax.f32 %s64_s27, %s27_s19 }
  0x16   :  { %v33_v4 = vstv %s28_s28 }
  0x17   :  { %v34_v5 = vmul.f32 %v33_v4, %v29_v0  ;;  %v35_v6 = vmul.f32 %v33_v4, %v30_v1  ;;  %v36_v7 = vmul.f32 %v33_v4, %v31_v2  ;;  %v37_v8 = vmul.f32 %v33_v4, %v32_v3 }
  0x19   :  { %38 = vst [vmem:[%s118_s3] sm:$0xff] %v34_v5  ;;  %39 = vst [vmem:[%s118_s3 + $0x8] sm:$0xff] %v35_v6 }
  0x1a   :  { %40 = vst [vmem:[%s118_s3 + $0x10] sm:$0xff] %v36_v7  ;;  %41 = vst [vmem:[%s118_s3 + $0x18] sm:$0xff] %v37_v8 }
  0x1b   :  { %46 = vsyncpa [#allocation5], 1 }

</bundles_post_ra>
